<compile_context>
chip_gen: v7x
topology: tpu7x:2x2x1
jax: 0.10.0
libtpu: 0.0.40
codegen_flags: <defaults>
</compile_context>

<pallas_src>
import functools

import jax
import jax.numpy as jnp
import numpy as np
from jax import lax
from jax.experimental import pallas as pl
from jax.experimental.pallas import tpu as pltpu

EPS = 1e-6


def _round_up(x, m):
    return ((x + m - 1) // m) * m


def _aton_kernel(sigma_ref, x_ref, w_ref, out_ref, acc_ref, *,
                 margin, alpha1, alpha2, n_linear, n_valid_rows, tm):
    i = pl.program_id(0)

    @pl.when(i == 0)
    def _init():
        acc_ref[0] = 0.0

    # --- Fused embedding: ONE MXU matmul for all 4 roles of this batch tile.
    # x_ref block is [4, tm, F]; concatenate the 4 slabs along sublanes.
    x = jnp.concatenate([x_ref[0], x_ref[1], x_ref[2], x_ref[3]], axis=0)
    # Weight stays in PyTorch layout [n_pad, F]; contract on the feature dim
    # (q @ k^T-style dimension numbers — no wrapper-side transpose needed).
    e = lax.dot_general(x, w_ref[...], (((1,), (1,)), ((), ())),
                        preferred_element_type=jnp.float32)     # [4*tm, n_pad]

    ea, ep, en, enn = (e[k * tm:(k + 1) * tm, :] for k in range(4))

    n_pad = e.shape[-1]
    # Zero the contribution (including the eps bias) of the zero-padded
    # embedding lanes (>= n_linear) so the padded-to-128 lane dim is exact.
    lane = lax.broadcasted_iota(jnp.int32, (1, n_pad), 1)
    lane_mask = (lane < n_linear).astype(jnp.float32)

    def pdist(a, b):
        d = (a - b + EPS) * lane_mask
        return jnp.sqrt(jnp.sum(d * d, axis=-1, keepdims=True))  # [tm, 1]

    d_ap = pdist(ea, ep)      # d(anchor, positive)
    d_an = pdist(ea, en)      # d(anchor, negative)
    d_ann = pdist(ea, enn)    # d(anchor, nanom)
    d_nnn = pdist(en, enn)    # d(negative, nanom)

    # Mask rows that are pure batch padding (they'd add `margin` to each sum).
    row = lax.broadcasted_iota(jnp.int32, (tm, 1), 0) + i * tm
    row_mask = (row < n_valid_rows).astype(jnp.float32)

    quad = jnp.sum(jnp.maximum(margin + d_ap - d_nnn, 0.0) * row_mask)
    tml1 = jnp.sum(jnp.maximum(d_ap - d_an + margin, 0.0) * row_mask)
    tml2 = jnp.sum(jnp.maximum(d_an - d_ann + margin, 0.0) * row_mask)

    s0 = sigma_ref[0]
    s1 = sigma_ref[1]
    w0 = 1.0 / (2.0 * s0 * s0)
    w1 = 1.0 / (2.0 * s1 * s1)
    acc_ref[0] += w0 * (quad + tml1) + w1 * tml2

    @pl.when(i == pl.num_programs(0) - 1)
    def _finalize():
        # Mean over the TRUE batch size, not the tile size.
        out_ref[0, 0] = alpha1 * (acc_ref[0] * (1.0 / n_valid_rows)) + alpha2 * 1.0


def aton_forward(anchor, positive, negative, nanom, weight, sigma_weight, *,
                 margin, alpha1, alpha2, block_rows=512, input_dtype=None):
    """ATONnet forward as one Pallas call.

    anchor/positive/negative/nanom: [B, n_feature]
    weight:       [n_linear, n_feature]   (PyTorch nn.Linear layout, no bias)
    sigma_weight: [2, 1]
    Returns the loss with shape (1,), matching the PyTorch module.
    input_dtype=jnp.bfloat16 halves HBM/VMEM traffic on v6e/v7x (f32 accum).
    """
    B, n_feature = anchor.shape
    n_linear = weight.shape[0]
    if input_dtype is None:
        input_dtype = anchor.dtype
    input_dtype = jnp.dtype(input_dtype)

    # Sublane alignment for the batch tile (f32: 8 rows, bf16: 16 rows).
    sub = 8 * (4 // input_dtype.itemsize)
    tm = min(int(block_rows), _round_up(B, sub))
    tm = _round_up(tm, sub)
    b_pad = _round_up(B, tm)
    grid = b_pad // tm

    # Lane-dense embedding dim: pad n_linear up to a multiple of 128 with zero
    # weight rows (masked out of the distance reduction in-kernel).
    n_pad = _round_up(n_linear, 128)

    # One stacked input stream -> one DMA + one MXU push per batch tile.
    x = jnp.stack([anchor, positive, negative, nanom], axis=0)   # [4, B, F]
    if b_pad != B:
        x = jnp.pad(x, ((0, 0), (0, b_pad - B), (0, 0)))
    x = x.astype(input_dtype)

    w = weight
    if n_pad != n_linear:
        w = jnp.pad(w, ((0, n_pad - n_linear), (0, 0)))
    w = w.astype(input_dtype)

    sigma = sigma_weight.reshape(2).astype(jnp.float32)

    kernel = functools.partial(
        _aton_kernel, margin=float(margin), alpha1=float(alpha1),
        alpha2=float(alpha2), n_linear=n_linear, n_valid_rows=B, tm=tm)

    grid_spec = pltpu.PrefetchScalarGridSpec(
        num_scalar_prefetch=0,
        grid=(grid,),
        in_specs=[
            pl.BlockSpec(memory_space=pltpu.MemorySpace.SMEM),       # sigma (2,)
            pl.BlockSpec((4, tm, n_feature), lambda i: (0, i, 0)),   # stacked x
            pl.BlockSpec((n_pad, n_feature), lambda i: (0, 0)),      # weight, resident
        ],
        out_specs=pl.BlockSpec(memory_space=pltpu.MemorySpace.SMEM),  # scalar loss
        scratch_shapes=[pltpu.SMEM((1,), jnp.float32)],               # accumulator
    )

    # NOTE(v7x): a further ~2x on the HBM-bound streaming phase is available by
    # splitting the batch grid across the 2 TensorCores ("parallel" leading
    # axis with per-core partial sums) — kept single-core here for simplicity.
    out = pl.pallas_call(
        kernel,
        grid_spec=grid_spec,
        out_shape=jax.ShapeDtypeStruct((1, 1), jnp.float32),
        compiler_params=pltpu.CompilerParams(
            dimension_semantics=("arbitrary",),         # batch axis is a reduction
            vmem_limit_bytes=32 * 1024 * 1024),
    )(sigma, x, w)
    return out.reshape(1)


def _reference(anchor, positive, negative, nanom, weight, sigma_weight,
               margin, alpha1, alpha2):
    ea, ep, en, enn = (x @ weight.T for x in (anchor, positive, negative, nanom))

    def pdist(x, y):
        return np.sqrt(np.sum((x - y + EPS) ** 2, axis=-1))

    d_ap, d_an, d_ann, d_nnn = pdist(ea, ep), pdist(ea, en), pdist(ea, enn), pdist(en, enn)
    quad = np.mean(np.maximum(margin + d_ap - d_nnn, 0.0))
    tml1 = np.mean(np.maximum(d_ap - d_an + margin, 0.0))
    tml2 = np.mean(np.maximum(d_an - d_ann + margin, 0.0))
    s0, s1 = sigma_weight[0, 0], sigma_weight[1, 0]
    loss_tml = quad / (2 * s0 ** 2) + tml1 / (2 * s0 ** 2) + tml2 / (2 * s1 ** 2)
    return alpha1 * loss_tml + alpha2 * 1.0


if __name__ == "__main__":
    B, n_feature, n_linear = 8, 32, 16
    margin, alpha1, alpha2 = 1.0, 1.0, 1.0

    key = jax.random.PRNGKey(0)
    k_a, k_p, k_n, k_nn, k_w, k_s = jax.random.split(key, 6)

    anchor = jax.random.normal(k_a, (B, n_feature), jnp.float32)
    positive = jax.random.normal(k_p, (B, n_feature), jnp.float32)
    negative = jax.random.normal(k_n, (B, n_feature), jnp.float32)
    nanom = jax.random.normal(k_nn, (B, n_feature), jnp.float32)

    w_bound = float(np.sqrt(6.0 / (n_feature + n_linear)))
    weight = jax.random.uniform(k_w, (n_linear, n_feature), jnp.float32,
                                minval=-w_bound, maxval=w_bound)
    s_bound = float(np.sqrt(6.0 / (1 + 2)))   # xavier_uniform bound for (2,1)
    sigma_weight = jax.random.uniform(k_s, (2, 1), jnp.float32,
                                      minval=0.3, maxval=0.3 + s_bound)

    ref = _reference(np.asarray(anchor), np.asarray(positive),
                     np.asarray(negative), np.asarray(nanom),
                     np.asarray(weight), np.asarray(sigma_weight),
                     margin, alpha1, alpha2)

    # f32 path — exact parity with the f32 reference.
    loss = aton_forward(anchor, positive, negative, nanom, weight, sigma_weight,
                        margin=margin, alpha1=alpha1, alpha2=alpha2)
    loss = jax.block_until_ready(loss)
    assert loss.shape == (1,)
    assert np.allclose(np.asarray(loss)[0], ref, rtol=1e-4, atol=1e-5), (loss, ref)

    # bf16 storage path (v6e/v7x bandwidth optimization) — f32 accumulation,
    # looser tolerance for the bf16 input rounding.
    loss_bf16 = aton_forward(anchor, positive, negative, nanom, weight,
                             sigma_weight, margin=margin, alpha1=alpha1,
                             alpha2=alpha2, input_dtype=jnp.bfloat16)
    loss_bf16 = jax.block_until_ready(loss_bf16)
    assert np.allclose(np.asarray(loss_bf16)[0], ref, rtol=1e-1, atol=1e-1), (loss_bf16, ref)

    print("KERNEL_OK")
</pallas_src>

<mosaic_0001>
module attributes {stable_mosaic.version = 11 : i64} {
  func.func @_aton_kernel(%arg0: i32, %arg1: memref<2xf32, #tpu.memory_space<smem>>, %arg2: memref<4x8x32xf32, #tpu.memory_space<vmem>>, %arg3: memref<128x32xf32, #tpu.memory_space<vmem>>, %arg4: memref<1x1xf32, #tpu.memory_space<smem>>, %arg5: memref<1xf32, #tpu.memory_space<smem>>) attributes {dimension_semantics = [#tpu.dimension_semantics<arbitrary>], iteration_bounds = array<i64: 1>, scalar_prefetch = 0 : i64, scratch_operands = 1 : i64, tpu.core_type = #tpu.core_type<tc>, window_params = [{transform_indices = @transform_0, window_bounds = array<i64: 2>}, {transform_indices = @transform_1, window_bounds = array<i64: 4, 8, 32>}, {pipeline_mode = #tpu.pipeline_mode<synchronous>, transform_indices = @transform_2, window_bounds = array<i64: 128, 32>}, {transform_indices = @transform_3, window_bounds = array<i64: 1, 1>}]} {
    %c0_i32 = arith.constant 0 : i32
    %0 = arith.cmpi eq, %arg0, %c0_i32 : i32
    %1 = arith.extui %0 : i1 to i32
    %c0_i32_0 = arith.constant 0 : i32
    %2 = arith.cmpi ne, %1, %c0_i32_0 : i32
    scf.if %2 {
      %cst_39 = arith.constant 0.000000e+00 : f32
      %c0_40 = arith.constant 0 : index
      %115 = memref.load %arg5[%c0_40] : memref<1xf32, #tpu.memory_space<smem>>
      memref.store %cst_39, %arg5[%c0_40] : memref<1xf32, #tpu.memory_space<smem>>
    } else {
    }
    %c0 = arith.constant 0 : index
    %c0_1 = arith.constant 0 : index
    %c0_2 = arith.constant 0 : index
    %3 = vector.load %arg2[%c0, %c0_1, %c0_2] : memref<4x8x32xf32, #tpu.memory_space<vmem>>, vector<1x8x32xf32>
    %4 = vector.shape_cast %3 : vector<1x8x32xf32> to vector<8x32xf32>
    %c1 = arith.constant 1 : index
    %c0_3 = arith.constant 0 : index
    %c0_4 = arith.constant 0 : index
    %5 = vector.load %arg2[%c1, %c0_3, %c0_4] : memref<4x8x32xf32, #tpu.memory_space<vmem>>, vector<1x8x32xf32>
    %6 = vector.shape_cast %5 : vector<1x8x32xf32> to vector<8x32xf32>
    %c2 = arith.constant 2 : index
    %c0_5 = arith.constant 0 : index
    %c0_6 = arith.constant 0 : index
    %7 = vector.load %arg2[%c2, %c0_5, %c0_6] : memref<4x8x32xf32, #tpu.memory_space<vmem>>, vector<1x8x32xf32>
    %8 = vector.shape_cast %7 : vector<1x8x32xf32> to vector<8x32xf32>
    %c3 = arith.constant 3 : index
    %c0_7 = arith.constant 0 : index
    %c0_8 = arith.constant 0 : index
    %9 = vector.load %arg2[%c3, %c0_7, %c0_8] : memref<4x8x32xf32, #tpu.memory_space<vmem>>, vector<1x8x32xf32>
    %10 = vector.shape_cast %9 : vector<1x8x32xf32> to vector<8x32xf32>
    %11 = tpu.concatenate %4, %6, %8, %10 in 0 : vector<8x32xf32>, vector<8x32xf32>, vector<8x32xf32>, vector<8x32xf32> -> vector<32x32xf32>
    %c0_9 = arith.constant 0 : index
    %c0_10 = arith.constant 0 : index
    %12 = vector.load %arg3[%c0_9, %c0_10] : memref<128x32xf32, #tpu.memory_space<vmem>>, vector<128x32xf32>
    %cst = arith.constant dense<0.000000e+00> : vector<32x128xf32>
    %13 = tpu.matmul %11, %12, %cst {dimension_numbers = #tpu.dot_dimension_numbers<[1], [1], [0], [0], [0, 0, 1, 0], [], []>} : vector<32x32xf32>, vector<128x32xf32>, vector<32x128xf32> -> vector<32x128xf32>
    %14 = vector.extract_strided_slice %13 {offsets = [0, 0], sizes = [8, 128], strides = [1, 1]} : vector<32x128xf32> to vector<8x128xf32>
    %15 = vector.extract_strided_slice %13 {offsets = [8, 0], sizes = [8, 128], strides = [1, 1]} : vector<32x128xf32> to vector<8x128xf32>
    %16 = vector.extract_strided_slice %13 {offsets = [16, 0], sizes = [8, 128], strides = [1, 1]} : vector<32x128xf32> to vector<8x128xf32>
    %17 = vector.extract_strided_slice %13 {offsets = [24, 0], sizes = [8, 128], strides = [1, 1]} : vector<32x128xf32> to vector<8x128xf32>
    %18 = tpu.iota {dimensions = array<i32: 1>} : vector<1x128xi32>
    %c16_i32 = arith.constant 16 : i32
    %19 = vector.broadcast %c16_i32 : i32 to vector<1x128xi32>
    %20 = arith.cmpi slt, %18, %19 : vector<1x128xi32>
    %21 = arith.extui %20 : vector<1x128xi1> to vector<1x128xi32>
    %22 = arith.sitofp %21 : vector<1x128xi32> to vector<1x128xf32>
    %23 = arith.subf %14, %15 : vector<8x128xf32>
    %cst_11 = arith.constant 9.99999997E-7 : f32
    %24 = vector.broadcast %cst_11 : f32 to vector<8x128xf32>
    %25 = arith.addf %23, %24 : vector<8x128xf32>
    %26 = vector.broadcast %22 : vector<1x128xf32> to vector<8x128xf32>
    %27 = arith.mulf %25, %26 : vector<8x128xf32>
    %28 = arith.mulf %27, %27 : vector<8x128xf32>
    %cst_12 = arith.constant dense<0.000000e+00> : vector<8xf32>
    %29 = vector.multi_reduction <add>, %28, %cst_12 [1] : vector<8x128xf32> to vector<8xf32>
    %30 = vector.shape_cast %29 : vector<8xf32> to vector<8x1xf32>
    %31 = math.sqrt %30 : vector<8x1xf32>
    %32 = arith.subf %14, %16 : vector<8x128xf32>
    %cst_13 = arith.constant 9.99999997E-7 : f32
    %33 = vector.broadcast %cst_13 : f32 to vector<8x128xf32>
    %34 = arith.addf %32, %33 : vector<8x128xf32>
    %35 = vector.broadcast %22 : vector<1x128xf32> to vector<8x128xf32>
    %36 = arith.mulf %34, %35 : vector<8x128xf32>
    %37 = arith.mulf %36, %36 : vector<8x128xf32>
    %cst_14 = arith.constant dense<0.000000e+00> : vector<8xf32>
    %38 = vector.multi_reduction <add>, %37, %cst_14 [1] : vector<8x128xf32> to vector<8xf32>
    %39 = vector.shape_cast %38 : vector<8xf32> to vector<8x1xf32>
    %40 = math.sqrt %39 : vector<8x1xf32>
    %41 = arith.subf %14, %17 : vector<8x128xf32>
    %cst_15 = arith.constant 9.99999997E-7 : f32
    %42 = vector.broadcast %cst_15 : f32 to vector<8x128xf32>
    %43 = arith.addf %41, %42 : vector<8x128xf32>
    %44 = vector.broadcast %22 : vector<1x128xf32> to vector<8x128xf32>
    %45 = arith.mulf %43, %44 : vector<8x128xf32>
    %46 = arith.mulf %45, %45 : vector<8x128xf32>
    %cst_16 = arith.constant dense<0.000000e+00> : vector<8xf32>
    %47 = vector.multi_reduction <add>, %46, %cst_16 [1] : vector<8x128xf32> to vector<8xf32>
    %48 = vector.shape_cast %47 : vector<8xf32> to vector<8x1xf32>
    %49 = math.sqrt %48 : vector<8x1xf32>
    %50 = arith.subf %16, %17 : vector<8x128xf32>
    %cst_17 = arith.constant 9.99999997E-7 : f32
    %51 = vector.broadcast %cst_17 : f32 to vector<8x128xf32>
    %52 = arith.addf %50, %51 : vector<8x128xf32>
    %53 = vector.broadcast %22 : vector<1x128xf32> to vector<8x128xf32>
    %54 = arith.mulf %52, %53 : vector<8x128xf32>
    %55 = arith.mulf %54, %54 : vector<8x128xf32>
    %cst_18 = arith.constant dense<0.000000e+00> : vector<8xf32>
    %56 = vector.multi_reduction <add>, %55, %cst_18 [1] : vector<8x128xf32> to vector<8xf32>
    %57 = vector.shape_cast %56 : vector<8xf32> to vector<8x1xf32>
    %58 = math.sqrt %57 : vector<8x1xf32>
    %59 = tpu.iota {dimensions = array<i32: 0>} : vector<8x1xi32>
    %c8_i32 = arith.constant 8 : i32
    %60 = arith.muli %arg0, %c8_i32 : i32
    %61 = vector.broadcast %60 : i32 to vector<8x1xi32>
    %62 = arith.addi %59, %61 : vector<8x1xi32>
    %c8_i32_19 = arith.constant 8 : i32
    %63 = vector.broadcast %c8_i32_19 : i32 to vector<8x1xi32>
    %64 = arith.cmpi slt, %62, %63 : vector<8x1xi32>
    %65 = arith.extui %64 : vector<8x1xi1> to vector<8x1xi32>
    %66 = arith.sitofp %65 : vector<8x1xi32> to vector<8x1xf32>
    %cst_20 = arith.constant 1.000000e+00 : f32
    %67 = vector.broadcast %cst_20 : f32 to vector<8x1xf32>
    %68 = arith.addf %67, %31 : vector<8x1xf32>
    %69 = arith.subf %68, %58 : vector<8x1xf32>
    %cst_21 = arith.constant 0.000000e+00 : f32
    %70 = vector.broadcast %cst_21 : f32 to vector<8x1xf32>
    %71 = arith.maximumf %69, %70 : vector<8x1xf32>
    %72 = arith.mulf %71, %66 : vector<8x1xf32>
    %73 = vector.shape_cast %72 : vector<8x1xf32> to vector<1x8x1xf32>
    %cst_22 = arith.constant dense<0.000000e+00> : vector<1xf32>
    %74 = vector.multi_reduction <add>, %73, %cst_22 [1, 2] : vector<1x8x1xf32> to vector<1xf32>
    %75 = vector.shape_cast %74 : vector<1xf32> to vector<1x1x1xf32>
    %76 = vector.extract %75[0, 0, 0] : f32 from vector<1x1x1xf32>
    %77 = arith.subf %31, %40 : vector<8x1xf32>
    %cst_23 = arith.constant 1.000000e+00 : f32
    %78 = vector.broadcast %cst_23 : f32 to vector<8x1xf32>
    %79 = arith.addf %77, %78 : vector<8x1xf32>
    %cst_24 = arith.constant 0.000000e+00 : f32
    %80 = vector.broadcast %cst_24 : f32 to vector<8x1xf32>
    %81 = arith.maximumf %79, %80 : vector<8x1xf32>
    %82 = arith.mulf %81, %66 : vector<8x1xf32>
    %83 = vector.shape_cast %82 : vector<8x1xf32> to vector<1x8x1xf32>
    %cst_25 = arith.constant dense<0.000000e+00> : vector<1xf32>
    %84 = vector.multi_reduction <add>, %83, %cst_25 [1, 2] : vector<1x8x1xf32> to vector<1xf32>
    %85 = vector.shape_cast %84 : vector<1xf32> to vector<1x1x1xf32>
    %86 = vector.extract %85[0, 0, 0] : f32 from vector<1x1x1xf32>
    %87 = arith.subf %40, %49 : vector<8x1xf32>
    %cst_26 = arith.constant 1.000000e+00 : f32
    %88 = vector.broadcast %cst_26 : f32 to vector<8x1xf32>
    %89 = arith.addf %87, %88 : vector<8x1xf32>
    %cst_27 = arith.constant 0.000000e+00 : f32
    %90 = vector.broadcast %cst_27 : f32 to vector<8x1xf32>
    %91 = arith.maximumf %89, %90 : vector<8x1xf32>
    %92 = arith.mulf %91, %66 : vector<8x1xf32>
    %93 = vector.shape_cast %92 : vector<8x1xf32> to vector<1x8x1xf32>
    %cst_28 = arith.constant dense<0.000000e+00> : vector<1xf32>
    %94 = vector.multi_reduction <add>, %93, %cst_28 [1, 2] : vector<1x8x1xf32> to vector<1xf32>
    %95 = vector.shape_cast %94 : vector<1xf32> to vector<1x1x1xf32>
    %96 = vector.extract %95[0, 0, 0] : f32 from vector<1x1x1xf32>
    %c0_29 = arith.constant 0 : index
    %97 = memref.load %arg1[%c0_29] : memref<2xf32, #tpu.memory_space<smem>>
    %c1_30 = arith.constant 1 : index
    %98 = memref.load %arg1[%c1_30] : memref<2xf32, #tpu.memory_space<smem>>
    %cst_31 = arith.constant 2.000000e+00 : f32
    %99 = arith.mulf %cst_31, %97 : f32
    %100 = arith.mulf %99, %97 : f32
    %cst_32 = arith.constant 1.000000e+00 : f32
    %101 = arith.divf %cst_32, %100 : f32
    %cst_33 = arith.constant 2.000000e+00 : f32
    %102 = arith.mulf %cst_33, %98 : f32
    %103 = arith.mulf %102, %98 : f32
    %cst_34 = arith.constant 1.000000e+00 : f32
    %104 = arith.divf %cst_34, %103 : f32
    %c0_35 = arith.constant 0 : index
    %105 = memref.load %arg5[%c0_35] : memref<1xf32, #tpu.memory_space<smem>>
    %106 = arith.addf %76, %86 : f32
    %107 = arith.mulf %101, %106 : f32
    %108 = arith.mulf %104, %96 : f32
    %109 = arith.addf %107, %108 : f32
    %110 = arith.addf %105, %109 : f32
    %c0_36 = arith.constant 0 : index
    %111 = memref.load %arg5[%c0_36] : memref<1xf32, #tpu.memory_space<smem>>
    memref.store %110, %arg5[%c0_36] : memref<1xf32, #tpu.memory_space<smem>>
    %c0_i32_37 = arith.constant 0 : i32
    %112 = arith.cmpi eq, %arg0, %c0_i32_37 : i32
    %113 = arith.extui %112 : i1 to i32
    %c0_i32_38 = arith.constant 0 : i32
    %114 = arith.cmpi ne, %113, %c0_i32_38 : i32
    scf.if %114 {
      %c0_39 = arith.constant 0 : index
      %115 = memref.load %arg5[%c0_39] : memref<1xf32, #tpu.memory_space<smem>>
      %cst_40 = arith.constant 1.250000e-01 : f32
      %116 = arith.mulf %115, %cst_40 : f32
      %cst_41 = arith.constant 1.000000e+00 : f32
      %117 = arith.mulf %cst_41, %116 : f32
      %cst_42 = arith.constant 1.000000e+00 : f32
      %118 = arith.addf %117, %cst_42 : f32
      %c0_43 = arith.constant 0 : index
      %c0_44 = arith.constant 0 : index
      %119 = memref.load %arg4[%c0_43, %c0_44] : memref<1x1xf32, #tpu.memory_space<smem>>
      memref.store %118, %arg4[%c0_43, %c0_44] : memref<1x1xf32, #tpu.memory_space<smem>>
    } else {
    }
    return
  }
  func.func @transform_0(%arg0: i32) -> i32 {
    %c0_i32 = arith.constant 0 : i32
    %c0_i32_0 = arith.constant 0 : i32
    return %c0_i32 : i32
  }
  func.func @transform_1(%arg0: i32) -> (i32, i32, i32) {
    %c0_i32 = arith.constant 0 : i32
    %c0_i32_0 = arith.constant 0 : i32
    %c0_i32_1 = arith.constant 0 : i32
    return %c0_i32, %arg0, %c0_i32_0 : i32, i32, i32
  }
  func.func @transform_2(%arg0: i32) -> (i32, i32) {
    %c0_i32 = arith.constant 0 : i32
    %c0_i32_0 = arith.constant 0 : i32
    %c0_i32_1 = arith.constant 0 : i32
    return %c0_i32, %c0_i32_0 : i32, i32
  }
  func.func @transform_3(%arg0: i32) -> (i32, i32) {
    %c0_i32 = arith.constant 0 : i32
    %c0_i32_0 = arith.constant 0 : i32
    %c0_i32_1 = arith.constant 0 : i32
    return %c0_i32, %c0_i32_0 : i32, i32
  }
}

</mosaic_0001>

<bundles_post_ra>
// kernel: tpu_custom_call.1
= control target key start
LH: loop header
LB: loop body
LE: loop exit
PB: predicated region body
PF: predicated region fallthrough
CT: control target
= control target key end

     0   :  { %8 = vsyncpa [#allocation5], 0  ;;  %s723_s0 = inlined_call_operand.vmem [shape: f32[2], index: 0, kind: input, shape index: {}]   ;;  %s724_s1 = inlined_call_operand.vmem [shape: f32[4,8,32], index: 1, kind: input, shape index: {}]   ;;  %s725_s2 = inlined_call_operand.vmem [shape: f32[128,32], index: 2, kind: input, shape index: {}]   ;;  %s726_s3 = inlined_call_operand.hbm [shape: f32[1,1], index: 3, kind: output, shape index: {}]  }
   0x1   :  { %9 = vsyncpa [#allocation4], 0  ;;  %s16_s14 = sshll.u32 %s723_s0, 4  ;;  %s17_s14 = int_to_ptr.vmem [resolvable:$true] %s16_s14 }
   0x2   :  { %s525_s15 = scalar_lea.vmem %s17_s14, 16  ;;  %p530_p1 = scmp.lt.s32.totalorder %s17_s14, %s17_s14 }
   0x3   :  { %p526_p0 = scmp.ne.s32.totalorder %s17_s14, %s525_s15  ;;  %p531_p2 = scmp.lt.s32.totalorder %s525_s15, %s525_s15 }
   0x5   :  { %p532_p3 = por %p531_p2, %p530_p1 }
   0x7   :  { %p533_p4 = pnand %p532_p3, %p526_p0 }
   0x9   :  { %536 = shalt.err (!%p533_p4)
}
   0xa   :  { %s551_s16 = smov [#allocation3]  }
   0xb   :  { %19 = dma.vmem_to_smem %s17_s14, 16, %s551_s16, [#allocation5]  }
   0xc   :  { %547 = dma.done.wait [#allocation5], 16  }
   0xd   :  { %548 = vsyncadd [#allocation5], 4294967280 }
   0xe   :  { %27 = sfence }
   0xf   :  { %v41_v0 = vld [vmem:[%s725_s2] sm:$0xff]  ;;  %v42_v1 = vld [vmem:[%s725_s2 + $0x8] sm:$0xff]  ;;  %vm57_vm0 = vcmask 261120   ;;  %v43_v2 = vld [vmem:[%s725_s2 + $0x10] sm:$0xff]  ;;  %v203_v29 = vlaneseq  ;;  %v552_v39 = vmov 0.0   ;;  %vm272_vm11 = vcmask 7168  }
  0x10   :  { %v436_v3 = vpack.c.bf16 %v42_v1, %v41_v0  ;;  %vm588_vm1 = vmpackc.low %vm57_vm0, %vm57_vm0  ;;  %v44_v5 = vld [vmem:[%s725_s2 + $0x18] sm:$0xff]  ;;  %v34_v7 = vld [vmem:[%s724_s1] sm:$0xff]  ;;  %s377_s27 = sld [smem:[#allocation3 + $0x1]]  ;;  %s537_s18 = scalar_lea.hbm %s726_s3, 16 }
  0x11   :  { %v442_v6 = vpack.c.bf16 %v44_v5, %v43_v2  ;;  %v45_v8 = vld [vmem:[%s725_s2 + $0x20] sm:$0xff]  ;;  %v46_v9 = vld [vmem:[%s725_s2 + $0x28] sm:$0xff]  ;;  %430 = vmatprep.mubr.msk.f32.mxu0 %vm57_vm0, %v34_v7  ;;  %v354_v10 = vld [vmem:[%s724_s1 + $0x10] sm:$0xff]  ;;  %v204_v30 = vand.u32 127, %v203_v29  ;;  %p538_p5 = scmp.ne.s32.totalorder %s726_s3, %s537_s18  ;;  %p541_p6 = scmp.lt.u32.totalorder %s537_s18, %s726_s3 }
  0x12   :  { %438 = vmatprep.subr.msk.bf16.mxu0 %vm588_vm1, %v436_v3  ;;  %484 = vmatprep.subr.msk.bf16.mxu1 %vm588_vm1, %v436_v3  ;;  %v448_v11 = vpack.c.bf16 %v46_v9, %v45_v8  ;;  %v47_v12 = vld [vmem:[%s725_s2 + $0x30] sm:$0xff]  ;;  %v48_v13 = vld [vmem:[%s725_s2 + $0x38] sm:$0xff]  ;;  %v49_v15 = vld [vmem:[%s725_s2 + $0x40] sm:$0xff] }
  0x13   :  { %441 = vmatpush3.bf16.xpose.msk.msra.mxu0 %vm588_vm1, %v436_v3  ;;  %492 = vmatpush3.bf16.xpose.msk.msra.mxu1 %vm588_vm1, %v436_v3  ;;  %v454_v14 = vpack.c.bf16 %v48_v13, %v47_v12  ;;  %v50_v16 = vld [vmem:[%s725_s2 + $0x48] sm:$0xff]  ;;  %v51_v18 = vld [vmem:[%s725_s2 + $0x50] sm:$0xff]  ;;  %v52_v19 = vld [vmem:[%s725_s2 + $0x58] sm:$0xff]  ;;  %vm205_vm2 = vcmp.lt.s32.totalorder %v204_v30, 16  ;;  %p543_p7 = pnand %p541_p6, %p538_p5 }
  0x14   :  { %444 = vmatprep.subr.msk.bf16.mxu0 %vm588_vm1, %v442_v6  ;;  %485 = vmatprep.subr.msk.bf16.mxu1 %vm588_vm1, %v442_v6  ;;  %v460_v17 = vpack.c.bf16 %v50_v16, %v49_v15  ;;  %v466_v20 = vpack.c.bf16 %v52_v19, %v51_v18  ;;  %v53_v21 = vld [vmem:[%s725_s2 + $0x60] sm:$0xff]  ;;  %v54_v22 = vld [vmem:[%s725_s2 + $0x68] sm:$0xff]  ;;  %v55_v24 = vld [vmem:[%s725_s2 + $0x70] sm:$0xff]  ;;  %v376_v40 = vsel %vm205_vm2, 1.0, %v552_v39 }
  0x15   :  { %433 = vmatprep.mubr.msk.f32.mxu1 %vm57_vm0, %v354_v10  ;;  %v472_v23 = vpack.c.bf16 %v54_v22, %v53_v21  ;;  %v56_v25 = vld [vmem:[%s725_s2 + $0x78] sm:$0xff]  ;;  %v353_v27 = vld [vmem:[%s724_s1 + $0x8] sm:$0xff] }
  0x16   :  { %v478_v26 = vpack.c.bf16 %v56_v25, %v55_v24  ;;  %v355_v28 = vld [vmem:[%s724_s1 + $0x18] sm:$0xff]  ;;  %s311_s1 = sld [smem:[#allocation3]]  ;;  %s318_s29 = smul.f32 2.0, %s377_s27 }
  0x18   :  { %s319_s4 = smul.f32 %s377_s27, %s318_s29 }
  0x1a   :  { %v320_v30 = vstv %s319_s4 }
  0x1b   :  { %447 = vmatpush3.bf16.xpose.msk.msra.mxu0 %vm588_vm1, %v442_v6  ;;  %493 = vmatpush3.bf16.xpose.msk.msra.mxu1 %vm588_vm1, %v442_v6 }
  0x1c   :  { %450 = vmatprep.subr.msk.bf16.mxu0 %vm588_vm1, %v448_v11  ;;  %486 = vmatprep.subr.msk.bf16.mxu1 %vm588_vm1, %v448_v11  ;;  %s313_s28 = smul.f32 2.0, %s311_s1 }
  0x1e   :  { %s314_s30 = smul.f32 %s313_s28, %s311_s1 }
  0x23   :  { %453 = vmatpush3.bf16.xpose.msk.msra.mxu0 %vm588_vm1, %v448_v11  ;;  %494 = vmatpush3.bf16.xpose.msk.msra.mxu1 %vm588_vm1, %v448_v11 }
  0x24   :  { %456 = vmatprep.subr.msk.bf16.mxu0 %vm588_vm1, %v454_v14  ;;  %487 = vmatprep.subr.msk.bf16.mxu1 %vm588_vm1, %v454_v14 }
  0x2b   :  { %459 = vmatpush3.bf16.xpose.msk.msra.mxu0 %vm588_vm1, %v454_v14  ;;  %495 = vmatpush3.bf16.xpose.msk.msra.mxu1 %vm588_vm1, %v454_v14 }
  0x2c   :  { %462 = vmatprep.subr.msk.bf16.mxu0 %vm588_vm1, %v460_v17  ;;  %488 = vmatprep.subr.msk.bf16.mxu1 %vm588_vm1, %v460_v17 }
  0x33   :  { %465 = vmatpush3.bf16.xpose.msk.msra.mxu0 %vm588_vm1, %v460_v17  ;;  %496 = vmatpush3.bf16.xpose.msk.msra.mxu1 %vm588_vm1, %v460_v17 }
  0x34   :  { %468 = vmatprep.subr.msk.bf16.mxu0 %vm588_vm1, %v466_v20  ;;  %489 = vmatprep.subr.msk.bf16.mxu1 %vm588_vm1, %v466_v20 }
  0x3b   :  { %471 = vmatpush3.bf16.xpose.msk.msra.mxu0 %vm588_vm1, %v466_v20  ;;  %497 = vmatpush3.bf16.xpose.msk.msra.mxu1 %vm588_vm1, %v466_v20 }
  0x3c   :  { %474 = vmatprep.subr.msk.bf16.mxu0 %vm588_vm1, %v472_v23  ;;  %490 = vmatprep.subr.msk.bf16.mxu1 %vm588_vm1, %v472_v23 }
  0x43   :  { %477 = vmatpush3.bf16.xpose.msk.msra.mxu0 %vm588_vm1, %v472_v23  ;;  %498 = vmatpush3.bf16.xpose.msk.msra.mxu1 %vm588_vm1, %v472_v23 }
  0x44   :  { %480 = vmatprep.subr.msk.bf16.mxu0 %vm588_vm1, %v478_v26  ;;  %491 = vmatprep.subr.msk.bf16.mxu1 %vm588_vm1, %v478_v26 }
  0x4b   :  { %483 = vmatpush3.bf16.xpose.msk.msra.mxu0 %vm588_vm1, %v478_v26  ;;  %499 = vmatpush3.bf16.xpose.msk.msra.mxu1 %vm588_vm1, %v478_v26 }
  0x52   :  { %431 = vmatmul.mubr.msk.f32.vlgmr.msra.gmra.mrb[0].mxu0 %vm57_vm0, %v353_v27  ;;  %434 = vmatmul.mubr.msk.f32.vlgmr.msra.gmra.mrb[0].mxu1 %vm57_vm0, %v355_v28  ;;  %v315_v27 = vstv %s314_s30 }
 0x125   :  { %v432_v31 = vpop.f32.mrb[0].mxu0  ;;  %v435_v32 = vpop.f32.mrb[0].mxu1 }
 0x126   :  { %v184_v33 = vpop.f32.mrb[1].mxu0  ;;  %v194_v34 = vpop.f32.mrb[1].mxu1 }
 0x127   :  { %v208_v35 = vsub.f32 %v184_v33, %v432_v31  ;;  %v234_v36 = vsub.f32 %v184_v33, %v435_v32  ;;  %v221_v37 = vsub.f32 %v184_v33, %v194_v34  ;;  %v247_v38 = vsub.f32 %v194_v34, %v435_v32 }
 0x129   :  { %v209_v41 = vadd.f32 1e-06, %v208_v35  ;;  %v235_v42 = vadd.f32 1e-06, %v234_v36  ;;  %v222_v43 = vadd.f32 1e-06, %v221_v37 }
 0x12a   :  { %v248_v44 = vadd.f32 1e-06, %v247_v38 }
 0x12b   :  { %v236_v45 = vmul.f32 %v376_v40, %v235_v42  ;;  %v210_v46 = vmul.f32 %v376_v40, %v209_v41  ;;  %v223_v50 = vmul.f32 %v376_v40, %v222_v43 }
 0x12c   :  { %v249_v49 = vmul.f32 %v376_v40, %v248_v44 }
 0x12d   :  { %v237_v47 = vmul.f32 %v236_v45, %v236_v45  ;;  %v211_v48 = vmul.f32 %v210_v46, %v210_v46  ;;  %v224_v52 = vmul.f32 %v223_v50, %v223_v50 }
 0x12e   :  { %v250_v51 = vmul.f32 %v249_v49, %v249_v49 }
 0x12f   :  { %238 = vadd.xlane.f32.xlu1 %v237_v47  ;;  %212 = vadd.xlane.f32.xlu0 %v211_v48 }
 0x133   :  { %251 = vadd.xlane.f32.xlu1 %v250_v51  ;;  %225 = vadd.xlane.f32.xlu0 %v224_v52 }
 0x1bc   :  { %v239_v53 = vpop.xlane.xlu1 %238  ;;  %v213_v54 = vpop.xlane.xlu0 %212 }
 0x1bd   :  { %513 = vrsqrt.f32 %v239_v53  ;;  %vm216_vm3 = vcmp.eq.f32.partialorder %v213_v54, inf  ;;  %v219_v61 = vand.u32 2147483648, %v213_v54  ;;  %vm218_vm4 = vcmp.eq.f32.partialorder %v213_v54, 0.0 }
 0x1be   :  { %515 = vrsqrt.f32 %v213_v54  ;;  %vm242_vm5 = vcmp.eq.f32.partialorder %v239_v53, inf  ;;  %v245_v3 = vand.u32 2147483648, %v239_v53  ;;  %vm244_vm10 = vcmp.eq.f32.partialorder %v239_v53, 0.0 }
 0x1c0   :  { %v252_v55 = vpop.xlane.xlu1 %251  ;;  %v226_v56 = vpop.xlane.xlu0 %225 }
 0x1c1   :  { %517 = vrsqrt.f32 %v252_v55  ;;  %vm255_vm6 = vcmp.eq.f32.partialorder %v252_v55, inf  ;;  %vm257_vm7 = vcmp.eq.f32.partialorder %v252_v55, 0.0  ;;  %v258_v4 = vand.u32 2147483648, %v252_v55 }
 0x1c2   :  { %519 = vrsqrt.f32 %v226_v56  ;;  %vm229_vm8 = vcmp.eq.f32.partialorder %v226_v56, inf  ;;  %v232_v9 = vand.u32 2147483648, %v226_v56  ;;  %vm231_vm9 = vcmp.eq.f32.partialorder %v226_v56, 0.0 }
 0x1c3   :  { %521 = vrcp.f32 %v315_v27 }
 0x1c4   :  { %523 = vrcp.f32 %v320_v30 }
 0x1c7   :  { %v514_v57 = vpop.eup %513 }
 0x1c8   :  { %v516_v58 = vpop.eup %515  ;;  %v241_v60 = vmul.f32 %v514_v57, %v239_v53 }
 0x1c9   :  { %v215_v59 = vmul.f32 %v516_v58, %v213_v54 }
 0x1ca   :  { %v243_v6 = vsel %vm242_vm5, %v239_v53, %v241_v60 }
 0x1cb   :  { %v518_v62 = vpop.eup %517  ;;  %v217_v63 = vsel %vm216_vm3, %v213_v54, %v215_v59  ;;  %v246_v14 = vsel %vm244_vm10, %v245_v3, %v243_v6 }
 0x1cc   :  { %v520_v0 = vpop.eup %519  ;;  %v220_v1 = vsel %vm218_vm4, %v219_v61, %v217_v63  ;;  %v254_v2 = vmul.f32 %v518_v62, %v252_v55 }
 0x1cd   :  { %v228_v5 = vmul.f32 %v520_v0, %v226_v56  ;;  %v268_v8 = vadd.f32 1.0, %v220_v1  ;;  %v522_v47 = vpop.eup %521 }
 0x1ce   :  { %v256_v7 = vsel %vm255_vm6, %v252_v55, %v254_v2  ;;  %v524_v49 = vpop.eup %523 }
 0x1cf   :  { %v259_v10 = vsel %vm257_vm7, %v258_v4, %v256_v7  ;;  %v230_v11 = vsel %vm229_vm8, %v226_v56, %v228_v5 }
 0x1d0   :  { %v269_v12 = vsub.f32 %v268_v8, %v259_v10  ;;  %v233_v13 = vsel %vm231_vm9, %v232_v9, %v230_v11 }
 0x1d1   :  { %v283_v15 = vsub.f32 %v220_v1, %v233_v13  ;;  %v297_v16 = vsub.f32 %v233_v13, %v246_v14 }
 0x1d2   :  { %v270_v17 = vmax.f32 %v269_v12, 0.0 }
 0x1d3   :  { %v284_v18 = vadd.f32 1.0, %v283_v15  ;;  %v298_v19 = vadd.f32 1.0, %v297_v16 }
 0x1d4   :  { %v273_v20 = vsel %vm272_vm11, %v270_v17, 0.0 }
 0x1d5   :  { %274 = vadd.xlane.f32.xlu0 %v273_v20  ;;  %v285_v21 = vmax.f32 %v284_v18, 0.0  ;;  %v299_v22 = vmax.f32 %v298_v19, 0.0 }
 0x1d7   :  { %v287_v23 = vsel %vm272_vm11, %v285_v21, 0.0  ;;  %v301_v24 = vsel %vm272_vm11, %v299_v22, 0.0 }
 0x1d8   :  { %288 = vadd.xlane.f32.xlu1 %v287_v23 }
 0x1d9   :  { %302 = vadd.xlane.f32.xlu0 %v301_v24 }
 0x262   :  { %v275_v25 = vpop.xlane.xlu0 %274 }
 0x263   :  { %v276_v26 = vrot.slane %v275_v25, 4 }
 0x265   :  { %v277_v28 = vadd.f32 %v276_v26, %v275_v25  ;;  %v289_v29 = vpop.xlane.xlu1 %288 }
 0x266   :  { %v290_v31 = vrot.slane %v289_v29, 4  ;;  %v303_v32 = vpop.xlane.xlu0 %302 }
 0x267   :  { %v278_v33 = vrot.slane %v277_v28, 2  ;;  %v304_v34 = vrot.slane %v303_v32, 4 }
 0x268   :  { %v291_v35 = vadd.f32 %v290_v31, %v289_v29 }
 0x269   :  { %v305_v36 = vadd.f32 %v304_v34, %v303_v32  ;;  %v279_v37 = vadd.f32 %v278_v33, %v277_v28 }
 0x26a   :  { %v292_v38 = vrot.slane %v291_v35, 2 }
 0x26b   :  { %v306_v39 = vrot.slane %v305_v36, 2  ;;  %v280_v40 = vrot.slane %v279_v37, 1 }
 0x26c   :  { %v293_v41 = vadd.f32 %v292_v38, %v291_v35 }
 0x26d   :  { %v307_v42 = vadd.f32 %v306_v39, %v305_v36  ;;  %v281_v43 = vadd.f32 %v280_v40, %v279_v37 }
 0x26e   :  { %v294_v44 = vrot.slane %v293_v41, 1 }
 0x26f   :  { %500 = vpush %v281_v43  ;;  %v308_v45 = vrot.slane %v307_v42, 1 }
 0x270   :  { %v295_v46 = vadd.f32 %v294_v44, %v293_v41 }
 0x271   :  { %v309_v48 = vadd.f32 %v308_v45, %v307_v42 }
 0x272   :  { %502 = vpush %v295_v46 }
 0x273   :  { %504 = vpush %v309_v48 }
 0x274   :  { %506 = vpush %v522_v47 }
 0x275   :  { %508 = vpush %v524_v49 }
 0x2a0   :  { %s501_s5 = spop %500 }
 0x2a3   :  { %s503_s6 = spop %502 }
 0x2a4   :  { %s324_s7 = sadd.f32 %s503_s6, %s501_s5  ;;  %s505_s8 = spop %504 }
 0x2a5   :  { %s507_s9 = spop %506 }
 0x2a6   :  { %s325_s10 = smul.f32 %s507_s9, %s324_s7  ;;  %s509_s11 = spop %508 }
 0x2a7   :  { %s326_s12 = smul.f32 %s509_s11, %s505_s8 }
 0x2a9   :  { %s327_s13 = sadd.f32 %s326_s12, %s325_s10 }
 0x2ab   :  { %s335_s14 = smul.f32 0.125, %s327_s13 }
 0x2ad   :  { %s336_s15 = sadd.f32 1.0, %s335_s14 }
 0x2af   :  { %338 = sst [smem:[#allocation6]] %s336_s15 }
 0x2b0   :  { %546 = shalt.err (!%p543_p7)
}
 0x2b1   :  { %s553_s22 = smov [#allocation6]  }
 0x2b2   :  { %346 = dma.smem_to_hbm %s553_s22, 16, %s726_s3, [#allocation4]  }
 0x2b3   :  { %549 = dma.done.wait [#allocation4], 16  }
 0x2b4   :  { %550 = vsyncadd [#allocation4], 4294967280 }
 0x2b5   :  { %350 = sfence }
 0x2b6   :  { %351 = vsyncpa [#allocation4], 1 }
 0x2b7   :  { %352 = vsyncpa [#allocation5], 1 }

</bundles_post_ra>
